<compile_context>
chip_gen: v5e
topology: v5e:2x2
jax: 0.10.0
libtpu: 0.0.40
codegen_flags: <defaults>
</compile_context>

<pallas_src>
import functools

import jax
import jax.numpy as jnp
from jax.experimental import pallas as pl
from jax.experimental.pallas import tpu as pltpu

DENSE_DIM = 64      # CM_Model.DenseLayer width: nn.Linear(hidden_dim, 64)
SCORE_PAD = 128     # lane-dense per-step score width (sliced to action_num in the wrapper)


def _ceil_to(x, m):
    return ((x + m - 1) // m) * m


def _slab_layout(emb_dim, hidden_dim, dense_dim=DENSE_DIM):
    """Row layout of the packed-weight slab; every section starts on an 8-row boundary."""
    gru_rows = _ceil_to(emb_dim + hidden_dim + 1, 8)     # contraction [x | h | 1]
    dense_rows = _ceil_to(hidden_dim + 1, 8)             # contraction [h | 1]
    clf_rows = _ceil_to(dense_dim + 1, 8)                # contraction [h1 | 1]
    dense_row0 = gru_rows
    clf_row0 = dense_row0 + dense_rows
    total_rows = clf_row0 + clf_rows
    return gru_rows, dense_row0, dense_rows, clf_row0, clf_rows, total_rows


# --------------------------------------------------------------------------------------
# Kernel: one GRU/RL step per grid iteration.
# --------------------------------------------------------------------------------------
def _cm_kernel(x_ref, h0_ref, w_ref, score_ref, h_last_ref, h_carry):
    step = pl.program_id(0)

    @pl.when(step == 0)
    def _():
        h_carry[...] = h0_ref[...]

    B, E = x_ref.shape
    H = h0_ref.shape[-1]
    score_cols = score_ref.shape[-1]
    gru_rows, dense_row0, dense_rows, clf_row0, clf_rows, _ = _slab_layout(E, H)

    x = x_ref[...]                         # [B, E]   (per-step input, streamed)
    h = h_carry[...]                       # [B, H]   (carried hidden state)
    ones = jnp.ones((B, 1), jnp.float32)

    def cat_pad(parts, width):
        used = sum(p.shape[1] for p in parts)
        if used < width:
            parts = list(parts) + [jnp.zeros((B, width - used), jnp.float32)]
        return jnp.concatenate(parts, axis=1)

    # --- GRU cell (torch nn.GRU, gate order r, z, n): ONE fused MXU pass.
    #     Packed columns [r | z | gi_n | gh_n]; packed rows [w_ih* | w_hh* | folded biases],
    #     so [x | h | 1] @ W performs both matmuls and every bias add at once. ---
    xh1 = cat_pad([x, h, ones], gru_rows)                                      # [B, gru_rows]
    g = jnp.dot(xh1, w_ref[0:gru_rows, 0:4 * H],
                preferred_element_type=jnp.float32)                            # [B, 4H]
    r = jax.nn.sigmoid(g[:, 0:H])
    z = jax.nn.sigmoid(g[:, H:2 * H])
    n = jnp.tanh(g[:, 2 * H:3 * H] + r * g[:, 3 * H:4 * H])                    # b_hh_n inside r*()
    h_new = (1.0 - z) * n + z * h

    h_carry[...] = h_new
    h_last_ref[...] = h_new        # constant out-block: written back to HBM once, after last step

    # --- rl_h1 = relu(DenseLayer(h)); stopScore = Classifier(rl_h1); biases as extra rows. ---
    d_in = cat_pad([h_new, ones], dense_rows)
    h1 = jnp.maximum(
        jnp.dot(d_in, w_ref[dense_row0:dense_row0 + dense_rows, 0:DENSE_DIM],
                preferred_element_type=jnp.float32), 0.0)                      # [B, 64]
    c_in = cat_pad([h1, ones], clf_rows)
    score_ref[...] = jnp.dot(
        c_in, w_ref[clf_row0:clf_row0 + clf_rows, 0:score_cols],
        preferred_element_type=jnp.float32)                                    # [B, SCORE_PAD]


# --------------------------------------------------------------------------------------
# Parameters (torch-style raw) and offline packing into a single VMEM slab.
# --------------------------------------------------------------------------------------
def init_params(key, emb_dim, hidden_dim, action_num, dense_dim=DENSE_DIM):
    """Raw torch-style per-gate parameters (gate order r, z, n)."""
    ks = jax.random.split(key, 8)
    s_gru = 1.0 / jnp.sqrt(hidden_dim)
    s_d = 1.0 / jnp.sqrt(hidden_dim)
    s_c = 1.0 / jnp.sqrt(dense_dim)
    u = jax.random.uniform
    return {
        "w_ih": u(ks[0], (3, emb_dim, hidden_dim), jnp.float32, -s_gru, s_gru),
        "w_hh": u(ks[1], (3, hidden_dim, hidden_dim), jnp.float32, -s_gru, s_gru),
        "b_ih": u(ks[2], (3, 1, hidden_dim), jnp.float32, -s_gru, s_gru),
        "b_hh": u(ks[3], (3, 1, hidden_dim), jnp.float32, -s_gru, s_gru),
        "w_d": u(ks[4], (hidden_dim, dense_dim), jnp.float32, -s_d, s_d),
        "b_d": u(ks[5], (1, dense_dim), jnp.float32, -s_d, s_d),
        "w_c": u(ks[6], (dense_dim, action_num), jnp.float32, -s_c, s_c),
        "b_c": u(ks[7], (1, action_num), jnp.float32, -s_c, s_c),
    }


def pack_params(raw, dense_dim=DENSE_DIM):
    """Offline re-layout: ALL weights + biases in one 8x128-aligned f32 slab (single DMA)."""
    w_ih, w_hh, b_ih, b_hh = raw["w_ih"], raw["w_hh"], raw["b_ih"], raw["b_hh"]
    E, H = w_ih.shape[1], w_ih.shape[2]
    A = raw["w_c"].shape[-1]
    _, dense_row0, _, clf_row0, _, total_rows = _slab_layout(E, H, dense_dim)
    cols = _ceil_to(max(4 * H, dense_dim, A, SCORE_PAD), 128)

    z = lambda *s: jnp.zeros(s, jnp.float32)
    # GRU section: rows [x | h | 1], columns [r | z | gi_n | gh_n].
    w_x = jnp.concatenate([w_ih[0], w_ih[1], w_ih[2], z(E, H)], axis=1)                 # [E, 4H]
    w_h = jnp.concatenate([w_hh[0], w_hh[1], z(H, H), w_hh[2]], axis=1)                 # [H, 4H]
    b_row = jnp.concatenate([b_ih[0] + b_hh[0], b_ih[1] + b_hh[1], b_ih[2], b_hh[2]],
                            axis=1)                                                     # [1, 4H]
    gru_block = jnp.concatenate([w_x, w_h, b_row], axis=0)                              # [E+H+1, 4H]

    dense_block = jnp.concatenate([raw["w_d"], raw["b_d"]], axis=0)                     # [H+1, 64]
    clf_block = jnp.concatenate([raw["w_c"], raw["b_c"]], axis=0)                       # [65, A]

    slab = jnp.zeros((total_rows, cols), jnp.float32)
    slab = slab.at[0:E + H + 1, 0:4 * H].set(gru_block)
    slab = slab.at[dense_row0:dense_row0 + H + 1, 0:dense_dim].set(dense_block)
    slab = slab.at[clf_row0:clf_row0 + dense_dim + 1, 0:A].set(clf_block)
    return slab


# --------------------------------------------------------------------------------------
# Wrappers.
# --------------------------------------------------------------------------------------
def _rollout(xs, rl_state, w_slab, action_num):
    """xs: [n_steps, B, E]; rl_state: [1, B, H]; weights resident across all steps."""
    n_steps, B, E = xs.shape
    H = rl_state.shape[-1]
    h0 = rl_state[0]                                           # [B, H]

    scores_pad, h_last = pl.pallas_call(
        _cm_kernel,
        out_shape=(jax.ShapeDtypeStruct((n_steps, B, SCORE_PAD), jnp.float32),
                   jax.ShapeDtypeStruct((B, H), jnp.float32)),
        grid=(n_steps,),
        in_specs=[
            pl.BlockSpec((None, B, E), lambda s: (s, 0, 0)),   # per-step x, streamed
            pl.BlockSpec((B, H), lambda s: (0, 0)),            # h0: DMA'd once, resident
            pl.BlockSpec(w_slab.shape, lambda s: (0, 0)),      # packed weights: resident
        ],
        out_specs=(
            pl.BlockSpec((None, B, SCORE_PAD), lambda s: (s, 0, 0)),  # lane-dense score slab
            pl.BlockSpec((B, H), lambda s: (0, 0)),                   # final hidden state
        ),
        scratch_shapes=[pltpu.VMEM((B, H), jnp.float32)],             # carried hidden state
        compiler_params=pltpu.CompilerParams(
            dimension_semantics=("arbitrary",)),                      # recurrence axis
    )(xs, h0, w_slab)

    scores = scores_pad[..., :action_num]                      # [n_steps, B, A]
    # isStop: trivial 2-lane argmax, done in the wrapper.  torch returns int64; int32 here.
    is_stop = jnp.argmax(scores, axis=-1).astype(jnp.int32)    # [n_steps, B]
    return scores, is_stop, h_last[None]                       # rl_new_state: [1, B, H]


@functools.partial(jax.jit, static_argnames=("action_num",))
def cm_model_forward(rl_input, rl_state, w_slab, *, action_num):
    """CM_Model.forward: rl_input [B, max_word_num, E], rl_state [1, B, H]."""
    assert rl_input.ndim == 3
    B, T, E = rl_input.shape
    # The torch reshape([B, hidden_dim]) is only valid when max_word_num == 1.
    assert T == 1, "CM_Model.forward requires max_word_num == 1 (torch reshape constraint)"
    xs = jnp.transpose(rl_input, (1, 0, 2))                    # [T=1, B, E]
    scores, is_stop, h_new = _rollout(xs, rl_state, w_slab, action_num)
    return scores[0], is_stop[0], h_new                        # (stopScore, isStop, rl_new_state)


@functools.partial(jax.jit, static_argnames=("action_num",))
def cm_model_rollout(xs, rl_state, w_slab, *, action_num):
    """Amortized variant: N RL steps in one pallas_call (launch + weight DMA paid once)."""
    return _rollout(xs, rl_state, w_slab, action_num)


# --------------------------------------------------------------------------------------
# Pure-JAX references (raw torch-style parameters).
# --------------------------------------------------------------------------------------
def _gru_step_ref(x_t, h, raw):
    r = jax.nn.sigmoid(x_t @ raw["w_ih"][0] + raw["b_ih"][0] + h @ raw["w_hh"][0] + raw["b_hh"][0])
    z = jax.nn.sigmoid(x_t @ raw["w_ih"][1] + raw["b_ih"][1] + h @ raw["w_hh"][1] + raw["b_hh"][1])
    n = jnp.tanh(x_t @ raw["w_ih"][2] + raw["b_ih"][2] + r * (h @ raw["w_hh"][2] + raw["b_hh"][2]))
    return (1.0 - z) * n + z * h


def _head_ref(h, raw):
    h1 = jax.nn.relu(h @ raw["w_d"] + raw["b_d"])
    return h1 @ raw["w_c"] + raw["b_c"]


def _reference_forward(rl_input, rl_state, raw):
    h = rl_state[0]
    for t in range(rl_input.shape[1]):
        h = _gru_step_ref(rl_input[:, t, :], h, raw)
    score = _head_ref(h, raw)
    return score, jnp.argmax(score, axis=1).astype(jnp.int32), h[None]


def _reference_rollout(xs, rl_state, raw):
    h = rl_state[0]
    scores = []
    for t in range(xs.shape[0]):
        h = _gru_step_ref(xs[t], h, raw)
        scores.append(_head_ref(h, raw))
    return jnp.stack(scores), h[None]


if __name__ == "__main__":
    # CM_Model(sent_emb_dim=8, hidden_dim=16, action_num=2); batch=2, max_word_num=1.
    B, T, E, H, A = 2, 1, 8, 16, 2
    key = jax.random.PRNGKey(0)
    k_in, k_st, k_p, k_xs, k_st2 = jax.random.split(key, 5)

    rl_input = jax.random.normal(k_in, (B, T, E), jnp.float32)
    rl_state = jax.random.normal(k_st, (1, B, H), jnp.float32)
    raw_params = init_params(k_p, E, H, A)
    w_slab = pack_params(raw_params)

    # 1) Original CM_Model.forward semantics (single step).
    stop_score, is_stop, rl_new_state = jax.block_until_ready(
        cm_model_forward(rl_input, rl_state, w_slab, action_num=A))
    ref_score, ref_stop, ref_state = _reference_forward(rl_input, rl_state, raw_params)
    assert stop_score.shape == (B, A) and is_stop.shape == (B,) and rl_new_state.shape == (1, B, H)
    assert bool(jnp.allclose(stop_score, ref_score, atol=1e-4, rtol=1e-4))
    assert bool(jnp.all(is_stop == ref_stop))
    assert bool(jnp.allclose(rl_new_state, ref_state, atol=1e-4, rtol=1e-4))

    # 2) Amortized multi-step rollout: one pallas_call, weights DMA'd once, hidden carried in
    #    VMEM scratch.  B=8 fills every f32 sublane (perf review: batch environments).
    N_STEPS, B2 = 8, 8
    xs = jax.random.normal(k_xs, (N_STEPS, B2, E), jnp.float32)
    rl_state2 = jax.random.normal(k_st2, (1, B2, H), jnp.float32)
    scores, stops, h_fin = jax.block_until_ready(
        cm_model_rollout(xs, rl_state2, w_slab, action_num=A))
    ref_scores, ref_fin = _reference_rollout(xs, rl_state2, raw_params)
    assert scores.shape == (N_STEPS, B2, A) and stops.shape == (N_STEPS, B2)
    assert h_fin.shape == (1, B2, H)
    assert bool(jnp.allclose(scores, ref_scores, atol=1e-4, rtol=1e-4))
    assert bool(jnp.allclose(h_fin, ref_fin, atol=1e-4, rtol=1e-4))

    print("KERNEL_OK")
</pallas_src>

<mosaic_0001>
module attributes {stable_mosaic.version = 11 : i64} {
  func.func @_cm_kernel(%arg0: i32, %arg1: memref<1x2x8xf32, #tpu.memory_space<vmem>>, %arg2: memref<2x16xf32, #tpu.memory_space<vmem>>, %arg3: memref<128x128xf32, #tpu.memory_space<vmem>>, %arg4: memref<1x2x128xf32, #tpu.memory_space<vmem>>, %arg5: memref<2x16xf32, #tpu.memory_space<vmem>>, %arg6: memref<2x16xf32, #tpu.memory_space<vmem>>) attributes {dimension_semantics = [#tpu.dimension_semantics<arbitrary>], iteration_bounds = array<i64: 1>, scalar_prefetch = 0 : i64, scratch_operands = 1 : i64, tpu.core_type = #tpu.core_type<tc>, window_params = [{transform_indices = @transform_0, window_bounds = array<i64: 1, 2, 8>}, {pipeline_mode = #tpu.pipeline_mode<synchronous>, transform_indices = @transform_1, window_bounds = array<i64: 2, 16>}, {pipeline_mode = #tpu.pipeline_mode<synchronous>, transform_indices = @transform_2, window_bounds = array<i64: 128, 128>}, {transform_indices = @transform_3, window_bounds = array<i64: 1, 2, 128>}, {pipeline_mode = #tpu.pipeline_mode<synchronous>, transform_indices = @transform_4, window_bounds = array<i64: 2, 16>}]} {
    %c0_i32 = arith.constant 0 : i32
    %0 = arith.cmpi eq, %arg0, %c0_i32 : i32
    %1 = arith.extui %0 : i1 to i32
    %c0_i32_0 = arith.constant 0 : i32
    %2 = arith.cmpi ne, %1, %c0_i32_0 : i32
    scf.if %2 {
      %c0_26 = arith.constant 0 : index
      %c0_27 = arith.constant 0 : index
      %48 = vector.load %arg2[%c0_26, %c0_27] : memref<2x16xf32, #tpu.memory_space<vmem>>, vector<2x16xf32>
      %c0_28 = arith.constant 0 : index
      %c0_29 = arith.constant 0 : index
      %49 = vector.load %arg6[%c0_28, %c0_29] : memref<2x16xf32, #tpu.memory_space<vmem>>, vector<2x16xf32>
      tpu.vector_store %arg6[%c0_28, %c0_29], %48 {strides = array<i32>} : memref<2x16xf32, #tpu.memory_space<vmem>>, vector<2x16xf32>,
    } else {
    }
    %c0 = arith.constant 0 : index
    %c0_1 = arith.constant 0 : index
    %c0_2 = arith.constant 0 : index
    %3 = vector.load %arg1[%c0, %c0_1, %c0_2] : memref<1x2x8xf32, #tpu.memory_space<vmem>>, vector<1x2x8xf32>
    %4 = vector.shape_cast %3 : vector<1x2x8xf32> to vector<2x8xf32>
    %c0_3 = arith.constant 0 : index
    %c0_4 = arith.constant 0 : index
    %5 = vector.load %arg6[%c0_3, %c0_4] : memref<2x16xf32, #tpu.memory_space<vmem>>, vector<2x16xf32>
    %cst = arith.constant 1.000000e+00 : f32
    %6 = vector.broadcast %cst : f32 to vector<2x1xf32>
    %cst_5 = arith.constant 0.000000e+00 : f32
    %7 = vector.broadcast %cst_5 : f32 to vector<2x7xf32>
    %8 = tpu.concatenate %4, %5, %6, %7 in 1 : vector<2x8xf32>, vector<2x16xf32>, vector<2x1xf32>, vector<2x7xf32> -> vector<2x32xf32>
    %c0_6 = arith.constant 0 : index
    %c0_7 = arith.constant 0 : index
    %9 = vector.load %arg3[%c0_6, %c0_7] : memref<128x128xf32, #tpu.memory_space<vmem>>, vector<32x64xf32>
    %cst_8 = arith.constant dense<0.000000e+00> : vector<2x64xf32>
    %10 = tpu.matmul %8, %9, %cst_8 {dimension_numbers = #tpu.dot_dimension_numbers<[1], [0], [0], [1], [0, 0, 1, 1], [], []>} : vector<2x32xf32>, vector<32x64xf32>, vector<2x64xf32> -> vector<2x64xf32>
    %11 = vector.extract_strided_slice %10 {offsets = [0, 0], sizes = [2, 16], strides = [1, 1]} : vector<2x64xf32> to vector<2x16xf32>
    %12 = arith.negf %11 : vector<2x16xf32>
    %13 = math.exp %12 : vector<2x16xf32>
    %cst_9 = arith.constant 1.000000e+00 : f32
    %14 = vector.broadcast %cst_9 : f32 to vector<2x16xf32>
    %15 = arith.addf %14, %13 : vector<2x16xf32>
    %16 = arith.divf %14, %15 : vector<2x16xf32>
    %17 = vector.extract_strided_slice %10 {offsets = [0, 16], sizes = [2, 16], strides = [1, 1]} : vector<2x64xf32> to vector<2x16xf32>
    %18 = arith.negf %17 : vector<2x16xf32>
    %19 = math.exp %18 : vector<2x16xf32>
    %cst_10 = arith.constant 1.000000e+00 : f32
    %20 = vector.broadcast %cst_10 : f32 to vector<2x16xf32>
    %21 = arith.addf %20, %19 : vector<2x16xf32>
    %22 = arith.divf %20, %21 : vector<2x16xf32>
    %23 = vector.extract_strided_slice %10 {offsets = [0, 32], sizes = [2, 16], strides = [1, 1]} : vector<2x64xf32> to vector<2x16xf32>
    %24 = vector.extract_strided_slice %10 {offsets = [0, 48], sizes = [2, 16], strides = [1, 1]} : vector<2x64xf32> to vector<2x16xf32>
    %25 = arith.mulf %16, %24 : vector<2x16xf32>
    %26 = arith.addf %23, %25 : vector<2x16xf32>
    %27 = math.tanh %26 : vector<2x16xf32>
    %cst_11 = arith.constant 1.000000e+00 : f32
    %28 = vector.broadcast %cst_11 : f32 to vector<2x16xf32>
    %29 = arith.subf %28, %22 : vector<2x16xf32>
    %30 = arith.mulf %29, %27 : vector<2x16xf32>
    %31 = arith.mulf %22, %5 : vector<2x16xf32>
    %32 = arith.addf %30, %31 : vector<2x16xf32>
    %c0_12 = arith.constant 0 : index
    %c0_13 = arith.constant 0 : index
    %33 = vector.load %arg6[%c0_12, %c0_13] : memref<2x16xf32, #tpu.memory_space<vmem>>, vector<2x16xf32>
    tpu.vector_store %arg6[%c0_12, %c0_13], %32 {strides = array<i32>} : memref<2x16xf32, #tpu.memory_space<vmem>>, vector<2x16xf32>,
    %c0_14 = arith.constant 0 : index
    %c0_15 = arith.constant 0 : index
    %34 = vector.load %arg5[%c0_14, %c0_15] : memref<2x16xf32, #tpu.memory_space<vmem>>, vector<2x16xf32>
    tpu.vector_store %arg5[%c0_14, %c0_15], %32 {strides = array<i32>} : memref<2x16xf32, #tpu.memory_space<vmem>>, vector<2x16xf32>,
    %cst_16 = arith.constant 0.000000e+00 : f32
    %35 = vector.broadcast %cst_16 : f32 to vector<2x7xf32>
    %36 = tpu.concatenate %32, %6, %35 in 1 : vector<2x16xf32>, vector<2x1xf32>, vector<2x7xf32> -> vector<2x24xf32>
    %c32 = arith.constant 32 : index
    %c0_17 = arith.constant 0 : index
    %37 = vector.load %arg3[%c32, %c0_17] : memref<128x128xf32, #tpu.memory_space<vmem>>, vector<24x64xf32>
    %cst_18 = arith.constant dense<0.000000e+00> : vector<2x64xf32>
    %38 = tpu.matmul %36, %37, %cst_18 {dimension_numbers = #tpu.dot_dimension_numbers<[1], [0], [0], [1], [0, 0, 1, 1], [], []>} : vector<2x24xf32>, vector<24x64xf32>, vector<2x64xf32> -> vector<2x64xf32>
    %cst_19 = arith.constant 0.000000e+00 : f32
    %39 = vector.broadcast %cst_19 : f32 to vector<2x64xf32>
    %40 = arith.maximumf %38, %39 : vector<2x64xf32>
    %cst_20 = arith.constant 0.000000e+00 : f32
    %41 = vector.broadcast %cst_20 : f32 to vector<2x7xf32>
    %42 = tpu.concatenate %40, %6, %41 in 1 : vector<2x64xf32>, vector<2x1xf32>, vector<2x7xf32> -> vector<2x72xf32>
    %c56 = arith.constant 56 : index
    %c0_21 = arith.constant 0 : index
    %43 = vector.load %arg3[%c56, %c0_21] : memref<128x128xf32, #tpu.memory_space<vmem>>, vector<72x128xf32>
    %cst_22 = arith.constant dense<0.000000e+00> : vector<2x128xf32>
    %44 = tpu.matmul %42, %43, %cst_22 {dimension_numbers = #tpu.dot_dimension_numbers<[1], [0], [0], [1], [0, 0, 1, 1], [], []>} : vector<2x72xf32>, vector<72x128xf32>, vector<2x128xf32> -> vector<2x128xf32>
    %c0_23 = arith.constant 0 : index
    %c0_24 = arith.constant 0 : index
    %c0_25 = arith.constant 0 : index
    %45 = vector.load %arg4[%c0_23, %c0_24, %c0_25] : memref<1x2x128xf32, #tpu.memory_space<vmem>>, vector<1x2x128xf32>
    %46 = vector.shape_cast %45 : vector<1x2x128xf32> to vector<2x128xf32>
    %47 = vector.shape_cast %44 : vector<2x128xf32> to vector<1x2x128xf32>
    tpu.vector_store %arg4[%c0_23, %c0_24, %c0_25], %47 {strides = array<i32>} : memref<1x2x128xf32, #tpu.memory_space<vmem>>, vector<1x2x128xf32>,
    return
  }
  func.func @transform_0(%arg0: i32) -> (i32, i32, i32) {
    %c0_i32 = arith.constant 0 : i32
    %c0_i32_0 = arith.constant 0 : i32
    %c0_i32_1 = arith.constant 0 : i32
    return %arg0, %c0_i32, %c0_i32_0 : i32, i32, i32
  }
  func.func @transform_1(%arg0: i32) -> (i32, i32) {
    %c0_i32 = arith.constant 0 : i32
    %c0_i32_0 = arith.constant 0 : i32
    %c0_i32_1 = arith.constant 0 : i32
    return %c0_i32, %c0_i32_0 : i32, i32
  }
  func.func @transform_2(%arg0: i32) -> (i32, i32) {
    %c0_i32 = arith.constant 0 : i32
    %c0_i32_0 = arith.constant 0 : i32
    %c0_i32_1 = arith.constant 0 : i32
    return %c0_i32, %c0_i32_0 : i32, i32
  }
  func.func @transform_3(%arg0: i32) -> (i32, i32, i32) {
    %c0_i32 = arith.constant 0 : i32
    %c0_i32_0 = arith.constant 0 : i32
    %c0_i32_1 = arith.constant 0 : i32
    return %arg0, %c0_i32, %c0_i32_0 : i32, i32, i32
  }
  func.func @transform_4(%arg0: i32) -> (i32, i32) {
    %c0_i32 = arith.constant 0 : i32
    %c0_i32_0 = arith.constant 0 : i32
    %c0_i32_1 = arith.constant 0 : i32
    return %c0_i32, %c0_i32_0 : i32, i32
  }
}

</mosaic_0001>

<bundles_post_ra>
// kernel: cm_model_forward.1
= control target key start
LH: loop header
LB: loop body
LE: loop exit
PB: predicated region body
PF: predicated region fallthrough
CT: control target
= control target key end

     0   :  { %10 = vsyncpa [#allocation4], 0  ;;  %s384_s0 = inlined_call_operand.vmem [shape: f32[1,2,8], index: 0, kind: input, shape index: {}]   ;;  %s385_s1 = inlined_call_operand.hbm [shape: f32[2,16], index: 1, kind: input, shape index: {}]   ;;  %s386_s2 = inlined_call_operand.hbm [shape: f32[128,128], index: 2, kind: input, shape index: {}]   ;;  %s387_s3 = inlined_call_operand.vmem [shape: f32[1,2,128], index: 3, kind: output, shape index: {0}]   ;;  %s388_s4 = inlined_call_operand.hbm [shape: f32[2,16], index: 4, kind: output, shape index: {1}]  }
   0x1   :  { %11 = vsyncpa [#allocation7], 0 }
   0x2   :  { %12 = vsyncpa [#allocation5], 0  ;;  %s20_s17 = sshll.u32 %s385_s1, 4  ;;  %s330_s18 = smov [#allocation3]   ;;  %s21_s17 = int_to_ptr.hbm [resolvable:$true] %s20_s17 }
   0x3   :  { %s22_s19 = sshll.u32 %s330_s18, 4  ;;  %s30_s22 = sshll.u32 %s386_s2, 4  ;;  %s23_s19 = int_to_ptr.vmem [resolvable:$true] %s22_s19  ;;  %s31_s22 = int_to_ptr.hbm [resolvable:$true] %s30_s22 }
   0x4   :  { %25 = dma.hbm_to_vmem [thread:$0]  %s21_s17, 32, %s23_s19, [#allocation4]  }
   0x5   :  { %s331_s23 = smov [#allocation6]   ;;  %s332_s25 = smov 128  }
   0x6   :  { %s32_s24 = sshll.u32 %s331_s23, 4  ;;  %s333_s26 = smov 8   ;;  %s33_s24 = int_to_ptr.vmem [resolvable:$true] %s32_s24 }
   0x7   :  { %38 = dma.hbm_to_vmem [thread:$0]  %s31_s22, 2048, %s33_s24, [#allocation7], %s332_s25, %s332_s25, %s333_s26  }
   0x8   :  { %324 = dma.done.wait [#allocation4], 32  }
   0x9   :  { %325 = vsyncadd [#allocation4], 4294967264 }
   0xa   :  { %326 = dma.done.wait [#allocation7], 2048  }
   0xb   :  { %327 = vsyncadd [#allocation7], 4294965248  ;;  %vm52_vm0 = vcmask 123904   ;;  %v51_v0 = vld [vmem:[#allocation3] sm:$0x3]  ;;  %v68_v2 = vld [vmem:[#allocation6 + $0x10] sm:$0xff] }
   0xc   :  { %v69_v1 = vld [vmem:[#allocation6 + $0x18] sm:$0xff]  ;;  %53 = vst.msk [vmem:[#allocation2] sm:$0x3] %vm52_vm0, %v51_v0  ;;  %s334_s1 = smov 16   ;;  %v67_v4 = vld [vmem:[#allocation6 + $0x8] sm:$0xff]  ;;  %v66_v5 = vld [vmem:[#allocation6] sm:$0xff] }
   0xd   :  { %86 = vmatpush.msra.mxu0 %v69_v1  ;;  %v54_v6 = vld [vmem:[%s384_s0] sm:$0x3]  ;;  %vm60_vm1 = vcmask 64512   ;;  %vm62_vm2 = vcmask 195584   ;;  %vm64_vm3 = vcmask 203776   ;;  %vm70_vm4 = vcmask 261120  }
   0xe   :  { %s335_s28 = smov 80   ;;  %s336_s0 = smov 32   ;;  %v148_v30 = vld [vmem:[#allocation6 + $0x30] sm:$0xff]  ;;  %v147_v31 = vld [vmem:[#allocation6 + $0x28] sm:$0xff]  ;;  %v146_v38 = vld [vmem:[#allocation6 + $0x20] sm:$0xff]  ;;  %vm142_vm9 = vcmask 130048  }
   0xf   :  { %87 = vmatpush.msra.mxu0 %v68_v2  ;;  %s337_s29 = smov 112   ;;  %165 = vmatpush.msra.mxu1 %v148_v30  ;;  %v185_v39 = vld [vmem:[#allocation6 + $0x78] sm:$0xff]  ;;  %v184_v40 = vld [vmem:[#allocation6 + $0x70] sm:$0xff]  ;;  %v183_v41 = vld [vmem:[#allocation6 + $0x68] sm:$0xff]  ;;  %vm144_vm10 = vcmask 138240   ;;  %vm173_vm11 = vcmask 523264  }
  0x10   :  { %197 = vmatpush.msra.mxu2 %v185_v39  ;;  %v182_v42 = vld [vmem:[#allocation6 + $0x60] sm:$0xff]  ;;  %v181_v43 = vld [vmem:[#allocation6 + $0x58] sm:$0xff]  ;;  %v180_v44 = vld [vmem:[#allocation6 + $0x50] sm:$0xff]  ;;  %vm175_vm12 = vcmask 531456   ;;  %vm186_vm13 = vcmask 588800   ;;  %s338_s30 = smov [#allocation8]  }
  0x11   :  { %88 = vmatpush.msra.mxu0 %v67_v4  ;;  %166 = vmatpush.msra.mxu1 %v147_v31  ;;  %v179_v48 = vld [vmem:[#allocation6 + $0x48] sm:$0xff]  ;;  %v178_v49 = vld [vmem:[#allocation6 + $0x40] sm:$0xff]  ;;  %v177_v50 = vld [vmem:[#allocation6 + $0x38] sm:$0xff]  ;;  %s218_s5 = sshll.u32 %s338_s30, 4  ;;  %s220_s8 = sshll.u32 %s388_s4, 4  ;;  %s219_s5 = int_to_ptr.vmem [resolvable:$true] %s218_s5  ;;  %s221_s8 = int_to_ptr.hbm [resolvable:$true] %s220_s8 }
  0x12   :  { %198 = vmatpush.msra.mxu2 %v184_v40 }
  0x13   :  { %v55_v3 = vld [vmem:[#allocation2] sm:$0x3]  ;;  %89 = vmatpush.msra.mxu0 %v66_v5  ;;  %167 = vmatpush.msra.mxu1 %v146_v38 }
  0x14   :  { %57 = vrot.lane.b32.xlu0 %v55_v3, %s333_s26  ;;  %130 = vrot.lane.b32.xlu2 %v55_v3, %s334_s1 }
  0x15   :  { %199 = vmatpush.msra.mxu2 %v183_v41 }
  0x17   :  { %200 = vmatpush.msra.mxu2 %v182_v42 }
  0x19   :  { %201 = vmatpush.msra.mxu2 %v181_v43 }
  0x1b   :  { %202 = vmatpush.msra.mxu2 %v180_v44 }
  0x1d   :  { %203 = vmatpush.msra.mxu2 %v179_v48 }
  0x1f   :  { %204 = vmatpush.msra.mxu2 %v178_v49 }
  0x21   :  { %205 = vmatpush.msra.mxu2 %v177_v50 }
  0x6e   :  { %v131_v32 = vpop.permute.xlu2 %130 }
  0x86   :  { %v58_v7 = vpop.permute.xlu0 %57 }
  0x87   :  { %v61_v8 = vsel %vm60_vm1, %v54_v6, %v58_v7 }
  0x88   :  { %v63_v9 = vsel %vm62_vm2, %v61_v8, 1.0 }
  0x89   :  { %v65_v10 = vsel %vm64_vm3, %v63_v9, 0.0 }
  0x8a   :  { %233 = vmatmul.msk.f32.vlgmr.msra.gmra.mxu0 %vm70_vm4, %v65_v10 }
 0x107   :  { %v91_v11 = vpop.f32.mrf.mxu0 }
 0x108   :  { %114 = vrot.lane.b32.xlu0 %v91_v11, %s335_s28  ;;  %v234_v12 = vmul.f32 -1.442695, %v91_v11 }
 0x10a   :  { %246 = vpow2.f32 %v234_v12 }
 0x110   :  { %v247_v13 = vpop.eup %246 }
 0x111   :  { %v97_v14 = vadd.f32 1.0, %v247_v13 }
 0x113   :  { %248 = vrcp.f32 %v97_v14  ;;  %v109_v20 = vand.u32 2147483648, %v97_v14  ;;  %vm103_vm6 = vweird.f32 %v97_v14  ;;  %v107_v21 = vand.u32 2147483647, %v97_v14 }
 0x115   :  { %v110_v23 = vor.u32 1.1754944e-38, %v109_v20  ;;  %vm108_vm8 = vcmp.eq.f32.partialorder %v107_v21, 8.507059e+37 }
 0x119   :  { %v249_v15 = vpop.eup %248 }
 0x11a   :  { %v99_v16 = vmul.f32 %v249_v15, %v97_v14  ;;  %vm104_vm5 = vweird.f32 %v249_v15 }
 0x11b   :  { %vm105_vm7 = vmor %vm103_vm6, %vm104_vm5 }
 0x11c   :  { %v100_v17 = vsub.f32 1.0, %v99_v16 }
 0x11e   :  { %v101_v18 = vmul.f32 %v249_v15, %v100_v17 }
 0x120   :  { %v102_v19 = vadd.f32 %v249_v15, %v101_v18 }
 0x122   :  { %v106_v22 = vsel %vm105_vm7, %v249_v15, %v102_v19 }
 0x123   :  { %v111_v24 = vsel %vm108_vm8, %v110_v23, %v106_v22 }
 0x124   :  { %v124_v33 = vsub.f32 1.0, %v111_v24  ;;  %v133_v35 = vmul.f32 %v131_v32, %v111_v24 }
 0x17a   :  { %v115_v25 = vpop.permute.xlu0 %114 }
 0x17b   :  { %v117_v26 = vmul.f32 %v115_v25, %v111_v24 }
 0x17d   :  { %119 = vrot.lane.b32.xlu1 %v117_v26, %s336_s0 }
 0x1ef   :  { %v120_v27 = vpop.permute.xlu1 %119 }
 0x1f0   :  { %v122_v28 = vadd.f32 %v120_v27, %v91_v11 }
 0x1f2   :  { %250 = vtanh.f32 %v122_v28 }
 0x1f8   :  { %v251_v29 = vpop.eup %250 }
 0x1f9   :  { %126 = vrot.lane.b32.xlu1 %v251_v29, %s337_s29 }
 0x26b   :  { %v127_v34 = vpop.permute.xlu1 %126 }
 0x26c   :  { %v129_v36 = vmul.f32 %v127_v34, %v124_v33 }
 0x26e   :  { %v134_v37 = vadd.f32 %v133_v35, %v129_v36 }
 0x270   :  { %136 = vrot.lane.b32.xlu2 %v134_v37, %s337_s29 }
 0x2ca   :  { %v137_v45 = vpop.permute.xlu2 %136 }
 0x2cb   :  { %140 = vst.msk [vmem:[#allocation2] sm:$0x3] %vm52_vm0, %v137_v45  ;;  %v143_v46 = vsel %vm142_vm9, %v137_v45, 1.0 }
 0x2cc   :  { %141 = vst.msk [vmem:[#allocation8] sm:$0x3] %vm52_vm0, %v137_v45  ;;  %v145_v47 = vsel %vm144_vm10, %v143_v46, 0.0 }
 0x2cd   :  { %235 = vmatmul.msk.f32.vlgmr.msra.gmra.mxu1 %vm62_vm2, %v145_v47  ;;  %223 = dma.vmem_to_hbm [thread:$0]  %s219_s5, 32, %s221_s8, [#allocation5]  }
 0x34a   :  { %v169_v51 = vpop.f32.mrf.mxu1 }
 0x34b   :  { %v172_v52 = vmax.f32 %v169_v51, 0.0 }
 0x34d   :  { %v174_v53 = vsel %vm173_vm11, %v172_v52, 1.0 }
 0x34e   :  { %v176_v54 = vsel %vm175_vm12, %v174_v53, 0.0 }
 0x34f   :  { %236 = vmatmul.msk.f32.vlgmr.msra.gmra.mxu2 %vm186_vm13, %v176_v54 }
 0x3d2   :  { %v207_v55 = vpop.f32.mrf.mxu2 }
 0x3d3   :  { %210 = vst [vmem:[%s387_s3] sm:$0x3] %v207_v55 }
 0x3d4   :  { %328 = dma.done.wait [#allocation5], 32  }
 0x3d5   :  { %329 = vsyncadd [#allocation5], 4294967264 }
 0x3d6   :  { %230 = vsyncpa [#allocation4], 1 }
 0x3d7   :  { %231 = vsyncpa [#allocation7], 1 }
 0x3d8   :  { %232 = vsyncpa [#allocation5], 1 }

</bundles_post_ra>
